<compile_context>
chip_gen: v7x
topology: tpu7x:2x2x1
jax: 0.10.0
libtpu: 0.0.40
codegen_flags: <defaults>
</compile_context>

<pallas_src>
import functools

import jax
import jax.numpy as jnp
from jax.experimental import pallas as pl
from jax.experimental.pallas import tpu as pltpu


_COLS = 512       # lane-dense last dim: 4 x 128 lanes, unmasked stores
_ROW_TILE = 1024  # 1024 x 512 f32 = 2 MiB per buffer -> v7x VMEM safe


def _gaussian_noise_kernel(seed_ref, x_ref, o_ref, *, std):
    block_rows, cols = x_ref.shape
    i = pl.program_id(0)

    seed_u = seed_ref[0].astype(jnp.uint32)

    # Unique 32-bit counter per element: global flat index of this tile.
    row = jax.lax.broadcasted_iota(jnp.int32, (block_rows, cols), 0).astype(jnp.uint32)
    col = jax.lax.broadcasted_iota(jnp.int32, (block_rows, cols), 1).astype(jnp.uint32)
    row_off = (i * block_rows).astype(jnp.uint32)
    ctr = (row + row_off) * jnp.uint32(cols) + col

    # Mix in the seed, then apply the lowbias32 integer mixer (VPU-only ops).
    h = ctr ^ (seed_u * jnp.uint32(0x9E3779B9))
    h = h ^ (h >> 16)
    h = h * jnp.uint32(0x7FEB352D)
    h = h ^ (h >> 15)
    h = h * jnp.uint32(0x846CA68B)
    h = h ^ (h >> 16)

    # Irwin-Hall(k=4): sum of the 4 bytes of the hash word.
    #   each byte: uniform on {0..255}, mean 127.5, var (256^2-1)/12
    #   sum:       mean 510, var 21845  -> exact unit-variance normalisation.
    m = jnp.uint32(0xFF)
    s = (h & m) + ((h >> 8) & m) + ((h >> 16) & m) + (h >> 24)
    scale = std / (21845.0 ** 0.5)
    noise = (s.astype(jnp.int32).astype(jnp.float32) - 510.0) * scale

    o_ref[...] = (x_ref[...].astype(jnp.float32) + noise).astype(o_ref.dtype)


def gaussian_noise(x, seed, std=0.05):
    """Returns x + fresh ~N(0, std) noise of the same shape (NCHW or any)."""
    orig_shape = x.shape
    flat = x.reshape(-1)
    total = flat.shape[0]

    cols = _COLS
    rows_needed = -(-total // cols)  # cdiv
    if rows_needed <= _ROW_TILE:
        block_rows = max(rows_needed, 1)   # single full-array block
        rows = block_rows
    else:
        block_rows = _ROW_TILE
        rows = (-(-rows_needed // block_rows)) * block_rows

    padded = rows * cols
    if padded != total:
        flat = jnp.pad(flat, (0, padded - total))
    x2 = flat.reshape(rows, cols)
    grid = rows // block_rows

    kernel = functools.partial(_gaussian_noise_kernel, std=float(std))

    out2 = pl.pallas_call(
        kernel,
        out_shape=jax.ShapeDtypeStruct((rows, cols), x.dtype),
        grid_spec=pltpu.PrefetchScalarGridSpec(
            num_scalar_prefetch=1,  # seed lands in SMEM
            grid=(grid,),
            in_specs=[pl.BlockSpec((block_rows, cols), lambda i, seed: (i, 0))],
            out_specs=pl.BlockSpec((block_rows, cols), lambda i, seed: (i, 0)),
        ),
        compiler_params=pltpu.CompilerParams(
            dimension_semantics=("parallel",),      # megacore sharding on v7x
            vmem_limit_bytes=32 * 1024 * 1024,      # explicit, v7x-safe budget
        ),
    )(jnp.asarray([seed], dtype=jnp.int32), x2)

    return out2.reshape(-1)[:total].reshape(orig_shape)


if __name__ == "__main__":
    key = jax.random.PRNGKey(0)
    # Small shape consistent with the module's default buffer (.., 1, 28, 28):
    N, C, H, W = 2, 1, 28, 28
    x = jax.random.normal(key, (N, C, H, W), dtype=jnp.float32)

    std = 0.05
    y = gaussian_noise(x, seed=1234, std=std)
    y = jax.block_until_ready(y)

    # Sanity checks: shape/dtype preserved; added noise has ~zero mean and ~std.
    assert y.shape == x.shape and y.dtype == x.dtype
    diff = y - x
    assert float(jnp.abs(jnp.mean(diff))) < 0.02
    assert abs(float(jnp.std(diff)) - std) < 0.02

    print("KERNEL_OK")
</pallas_src>

<mosaic_0001>
module attributes {stable_mosaic.version = 11 : i64} {
  func.func @_gaussian_noise_kernel(%arg0: i32, %arg1: memref<1xi32, #tpu.memory_space<smem>>, %arg2: memref<4x512xf32, #tpu.memory_space<vmem>>, %arg3: memref<4x512xf32, #tpu.memory_space<vmem>>) attributes {dimension_semantics = [#tpu.dimension_semantics<parallel>], iteration_bounds = array<i64: 1>, scalar_prefetch = 1 : i64, scratch_operands = 0 : i64, tpu.core_type = #tpu.core_type<tc>, window_params = [{transform_indices = @transform_0, window_bounds = array<i64: 4, 512>}, {transform_indices = @transform_1, window_bounds = array<i64: 4, 512>}]} {
    %c0 = arith.constant 0 : index
    %0 = memref.load %arg1[%c0] : memref<1xi32, #tpu.memory_space<smem>>
    %1 = tpu.iota {dimensions = array<i32: 0>} : vector<4x512xi32>
    %2 = tpu.iota {dimensions = array<i32: 1>} : vector<4x512xi32>
    %c4_i32 = arith.constant 4 : i32
    %3 = arith.muli %arg0, %c4_i32 : i32
    %4 = vector.broadcast %3 : i32 to vector<4x512xi32>
    %5 = arith.addi %1, %4 : vector<4x512xi32>
    %c512_i32 = arith.constant 512 : i32
    %6 = vector.broadcast %c512_i32 : i32 to vector<4x512xi32>
    %7 = arith.muli %5, %6 : vector<4x512xi32>
    %8 = arith.addi %7, %2 : vector<4x512xi32>
    %c-1640531527_i32 = arith.constant -1640531527 : i32
    %9 = arith.muli %0, %c-1640531527_i32 : i32
    %10 = vector.broadcast %9 : i32 to vector<4x512xi32>
    %11 = arith.xori %8, %10 : vector<4x512xi32>
    %c16_i32 = arith.constant 16 : i32
    %12 = vector.broadcast %c16_i32 : i32 to vector<4x512xi32>
    %13 = arith.shrui %11, %12 : vector<4x512xi32>
    %14 = arith.xori %11, %13 : vector<4x512xi32>
    %c2146121005_i32 = arith.constant 2146121005 : i32
    %15 = vector.broadcast %c2146121005_i32 : i32 to vector<4x512xi32>
    %16 = arith.muli %14, %15 : vector<4x512xi32>
    %c15_i32 = arith.constant 15 : i32
    %17 = vector.broadcast %c15_i32 : i32 to vector<4x512xi32>
    %18 = arith.shrui %16, %17 : vector<4x512xi32>
    %19 = arith.xori %16, %18 : vector<4x512xi32>
    %c-2073254261_i32 = arith.constant -2073254261 : i32
    %20 = vector.broadcast %c-2073254261_i32 : i32 to vector<4x512xi32>
    %21 = arith.muli %19, %20 : vector<4x512xi32>
    %c16_i32_0 = arith.constant 16 : i32
    %22 = vector.broadcast %c16_i32_0 : i32 to vector<4x512xi32>
    %23 = arith.shrui %21, %22 : vector<4x512xi32>
    %24 = arith.xori %21, %23 : vector<4x512xi32>
    %c255_i32 = arith.constant 255 : i32
    %25 = vector.broadcast %c255_i32 : i32 to vector<4x512xi32>
    %26 = arith.andi %24, %25 : vector<4x512xi32>
    %c8_i32 = arith.constant 8 : i32
    %27 = vector.broadcast %c8_i32 : i32 to vector<4x512xi32>
    %28 = arith.shrui %24, %27 : vector<4x512xi32>
    %c255_i32_1 = arith.constant 255 : i32
    %29 = vector.broadcast %c255_i32_1 : i32 to vector<4x512xi32>
    %30 = arith.andi %28, %29 : vector<4x512xi32>
    %31 = arith.addi %26, %30 : vector<4x512xi32>
    %c16_i32_2 = arith.constant 16 : i32
    %32 = vector.broadcast %c16_i32_2 : i32 to vector<4x512xi32>
    %33 = arith.shrui %24, %32 : vector<4x512xi32>
    %c255_i32_3 = arith.constant 255 : i32
    %34 = vector.broadcast %c255_i32_3 : i32 to vector<4x512xi32>
    %35 = arith.andi %33, %34 : vector<4x512xi32>
    %36 = arith.addi %31, %35 : vector<4x512xi32>
    %c24_i32 = arith.constant 24 : i32
    %37 = vector.broadcast %c24_i32 : i32 to vector<4x512xi32>
    %38 = arith.shrui %24, %37 : vector<4x512xi32>
    %39 = arith.addi %36, %38 : vector<4x512xi32>
    %40 = arith.sitofp %39 : vector<4x512xi32> to vector<4x512xf32>
    %cst = arith.constant 5.100000e+02 : f32
    %41 = vector.broadcast %cst : f32 to vector<4x512xf32>
    %42 = arith.subf %40, %41 : vector<4x512xf32>
    %cst_4 = arith.constant 3.38293758E-4 : f32
    %43 = vector.broadcast %cst_4 : f32 to vector<4x512xf32>
    %44 = arith.mulf %42, %43 : vector<4x512xf32>
    %c0_5 = arith.constant 0 : index
    %c0_6 = arith.constant 0 : index
    %45 = vector.load %arg2[%c0_5, %c0_6] : memref<4x512xf32, #tpu.memory_space<vmem>>, vector<4x512xf32>
    %46 = arith.addf %45, %44 : vector<4x512xf32>
    %c0_7 = arith.constant 0 : index
    %c0_8 = arith.constant 0 : index
    %47 = vector.load %arg3[%c0_7, %c0_8] : memref<4x512xf32, #tpu.memory_space<vmem>>, vector<4x512xf32>
    tpu.vector_store %arg3[%c0_7, %c0_8], %46 {strides = array<i32>} : memref<4x512xf32, #tpu.memory_space<vmem>>, vector<4x512xf32>,
    return
  }
  func.func @transform_0(%arg0: i32, %arg1: memref<1xi32, #tpu.memory_space<smem>>) -> (i32, i32) {
    %c0_i32 = arith.constant 0 : i32
    %c0_i32_0 = arith.constant 0 : i32
    return %arg0, %c0_i32 : i32, i32
  }
  func.func @transform_1(%arg0: i32, %arg1: memref<1xi32, #tpu.memory_space<smem>>) -> (i32, i32) {
    %c0_i32 = arith.constant 0 : i32
    %c0_i32_0 = arith.constant 0 : i32
    return %arg0, %c0_i32 : i32, i32
  }
}

</mosaic_0001>

<bundles_post_ra>
// kernel: tpu_custom_call.1
= control target key start
LH: loop header
LB: loop body
LE: loop exit
PB: predicated region body
PF: predicated region fallthrough
CT: control target
= control target key end

     0   :  { %8 = vsyncpa [#allocation5], 0  ;;  %s252_s0 = inlined_call_operand.<no memory space> [shape: s32[1], index: 0, kind: input, shape index: {}]   ;;  %s253_s1 = inlined_call_operand.hbm [shape: f32[4,512], index: 1, kind: input, shape index: {}]   ;;  %s254_s2 = inlined_call_operand.hbm [shape: f32[4,512], index: 2, kind: output, shape index: {}]  }
   0x1   :  { %9 = vsyncpa [#allocation6], 0  ;;  %s208_s9 = smov [#allocation4]   ;;  %s160_s13 = scalar_lea.hbm %s253_s1, 256 }
   0x2   :  { %s16_s10 = sshll.u32 %s208_s9, 4  ;;  %p161_p0 = scmp.ne.s32.totalorder %s253_s1, %s160_s13  ;;  %s17_s10 = int_to_ptr.vmem [resolvable:$true] %s16_s10 }
   0x3   :  { %p164_p1 = scmp.lt.u32.totalorder %s160_s13, %s253_s1 }
   0x5   :  { %p166_p2 = pnand %p164_p1, %p161_p0 }
   0x7   :  { %169 = shalt.err (!%p166_p2)
}
   0x8   :  { %s170_s18 = scalar_lea.vmem %s17_s10, 256  ;;  %p175_p4 = scmp.lt.s32.totalorder %s17_s10, %s17_s10 }
   0x9   :  { %p171_p3 = scmp.ne.s32.totalorder %s17_s10, %s170_s18  ;;  %p176_p5 = scmp.lt.s32.totalorder %s170_s18, %s170_s18 }
   0xb   :  { %p177_p6 = por %p176_p5, %p175_p4 }
   0xd   :  { %p178_p7 = pnand %p177_p6, %p171_p3 }
   0xf   :  { %181 = shalt.err (!%p178_p7)
}
  0x10   :  { %19 = dma.hbm_to_vmem [thread:$0]  %s253_s1, 256, %s17_s10, [#allocation5]  }
  0x11   :  { %204 = dma.done.wait [#allocation5], 256  }
  0x12   :  { %205 = vsyncadd [#allocation5], 4294967040  ;;  %v24_v0 = vlaneseq  ;;  %s39_s23 = smul.u32 2654435769, %s252_s0  ;;  %s209_s0 = smov [#allocation7]  }
  0x13   :  { %s145_s1 = sshll.u32 %s209_s0, 4  ;;  %s146_s1 = int_to_ptr.vmem [resolvable:$true] %s145_s1 }
  0x14   :  { %v25_v1 = vshrl.u32 %v24_v0, 7  ;;  %v27_v2 = vand.u32 127, %v24_v0  ;;  %v40_v7 = vstv %s39_s23  ;;  %s182_s24 = scalar_lea.vmem %s146_s1, 256  ;;  %p187_p9 = scmp.lt.s32.totalorder %s146_s1, %s146_s1 }
  0x15   :  { %p183_p8 = scmp.ne.s32.totalorder %s146_s1, %s182_s24  ;;  %p188_p10 = scmp.lt.s32.totalorder %s182_s24, %s182_s24 }
  0x16   :  { %v28_v3 = vadd.s32 128, %v27_v2  ;;  %v34_v4 = vmul.u32 512, %v25_v1  ;;  %v29_v5 = vadd.s32 256, %v27_v2  ;;  %v30_v6 = vadd.s32 384, %v27_v2 }
  0x17   :  { %p189_p11 = por %p188_p10, %p187_p9 }
  0x18   :  { %v35_v8 = vadd.s32 %v34_v4, %v27_v2  ;;  %v36_v9 = vadd.s32 %v34_v4, %v28_v3  ;;  %v37_v10 = vadd.s32 %v34_v4, %v29_v5  ;;  %v38_v11 = vadd.s32 %v34_v4, %v30_v6 }
  0x19   :  { %p190_p12 = pnand %p189_p11, %p183_p8 }
  0x1a   :  { %v41_v12 = vxor.u32 %v40_v7, %v35_v8  ;;  %v42_v13 = vxor.u32 %v40_v7, %v36_v9  ;;  %v43_v14 = vxor.u32 %v40_v7, %v37_v10  ;;  %v44_v15 = vxor.u32 %v40_v7, %v38_v11 }
  0x1c   :  { %v45_v16 = vshrl.u32 %v41_v12, 16  ;;  %v46_v17 = vshrl.u32 %v42_v13, 16  ;;  %v47_v18 = vshrl.u32 %v43_v14, 16  ;;  %v48_v19 = vshrl.u32 %v44_v15, 16 }
  0x1e   :  { %v49_v20 = vxor.u32 %v45_v16, %v41_v12  ;;  %v50_v21 = vxor.u32 %v46_v17, %v42_v13  ;;  %v51_v22 = vxor.u32 %v47_v18, %v43_v14  ;;  %v52_v23 = vxor.u32 %v48_v19, %v44_v15 }
  0x20   :  { %v53_v24 = vmul.u32 2146121005, %v49_v20  ;;  %v54_v25 = vmul.u32 2146121005, %v50_v21 }
  0x21   :  { %v55_v26 = vmul.u32 2146121005, %v51_v22  ;;  %v56_v27 = vmul.u32 2146121005, %v52_v23 }
  0x22   :  { %v57_v28 = vshrl.u32 %v53_v24, 15  ;;  %v58_v29 = vshrl.u32 %v54_v25, 15 }
  0x23   :  { %v59_v30 = vshrl.u32 %v55_v26, 15  ;;  %v60_v31 = vshrl.u32 %v56_v27, 15 }
  0x24   :  { %v61_v32 = vxor.u32 %v57_v28, %v53_v24  ;;  %v62_v33 = vxor.u32 %v58_v29, %v54_v25  ;;  %v125_v28 = vld [vmem:[#allocation4] sm:$0xff] }
  0x25   :  { %v63_v34 = vxor.u32 %v59_v30, %v55_v26  ;;  %v64_v35 = vxor.u32 %v60_v31, %v56_v27 }
  0x26   :  { %v65_v36 = vmul.u32 2221713035, %v61_v32  ;;  %v66_v37 = vmul.u32 2221713035, %v62_v33 }
  0x27   :  { %v67_v38 = vmul.u32 2221713035, %v63_v34  ;;  %v68_v39 = vmul.u32 2221713035, %v64_v35  ;;  %v126_v35 = vld [vmem:[#allocation4 + $0x8] sm:$0xff] }
  0x28   :  { %v69_v40 = vshrl.u32 %v65_v36, 16  ;;  %v70_v41 = vshrl.u32 %v66_v37, 16 }
  0x29   :  { %v71_v42 = vshrl.u32 %v67_v38, 16  ;;  %v72_v43 = vshrl.u32 %v68_v39, 16 }
  0x2a   :  { %v73_v44 = vxor.u32 %v69_v40, %v65_v36  ;;  %v74_v45 = vxor.u32 %v70_v41, %v66_v37 }
  0x2b   :  { %v75_v46 = vxor.u32 %v71_v42, %v67_v38  ;;  %v76_v47 = vxor.u32 %v72_v43, %v68_v39 }
  0x2c   :  { %v77_v48 = vand.u32 255, %v73_v44  ;;  %v78_v49 = vand.u32 255, %v74_v45  ;;  %v81_v50 = vshrl.u32 %v73_v44, 8  ;;  %v82_v51 = vshrl.u32 %v74_v45, 8 }
  0x2d   :  { %v93_v52 = vshrl.u32 %v73_v44, 16  ;;  %v94_v53 = vshrl.u32 %v74_v45, 16  ;;  %v105_v54 = vshrl.u32 %v73_v44, 24  ;;  %v106_v55 = vshrl.u32 %v74_v45, 24 }
  0x2e   :  { %v85_v56 = vand.u32 255, %v81_v50  ;;  %v86_v57 = vand.u32 255, %v82_v51  ;;  %v79_v58 = vand.u32 255, %v75_v46  ;;  %v80_v59 = vand.u32 255, %v76_v47 }
  0x2f   :  { %v97_v60 = vand.u32 255, %v93_v52  ;;  %v98_v61 = vand.u32 255, %v94_v53  ;;  %v83_v62 = vshrl.u32 %v75_v46, 8  ;;  %v84_v63 = vshrl.u32 %v76_v47, 8 }
  0x30   :  { %v89_v0 = vadd.s32 %v85_v56, %v77_v48  ;;  %v90_v1 = vadd.s32 %v86_v57, %v78_v49  ;;  %v95_v2 = vshrl.u32 %v75_v46, 16  ;;  %v96_v3 = vshrl.u32 %v76_v47, 16 }
  0x31   :  { %v87_v4 = vand.u32 255, %v83_v62  ;;  %v88_v5 = vand.u32 255, %v84_v63  ;;  %v107_v12 = vshrl.u32 %v75_v46, 24  ;;  %v108_v13 = vshrl.u32 %v76_v47, 24 }
  0x32   :  { %v101_v6 = vadd.s32 %v97_v60, %v89_v0  ;;  %v102_v7 = vadd.s32 %v98_v61, %v90_v1  ;;  %v99_v8 = vand.u32 255, %v95_v2  ;;  %v100_v9 = vand.u32 255, %v96_v3 }
  0x33   :  { %v91_v10 = vadd.s32 %v87_v4, %v79_v58  ;;  %v92_v11 = vadd.s32 %v88_v5, %v80_v59 }
  0x34   :  { %v109_v14 = vadd.s32 %v105_v54, %v101_v6  ;;  %v110_v15 = vadd.s32 %v106_v55, %v102_v7 }
  0x35   :  { %v103_v16 = vadd.s32 %v99_v8, %v91_v10  ;;  %v104_v17 = vadd.s32 %v100_v9, %v92_v11 }
  0x36   :  { %v113_v18 = vcvt.s32.f32 %v109_v14  ;;  %v114_v19 = vcvt.s32.f32 %v110_v15 }
  0x37   :  { %v111_v20 = vadd.s32 %v107_v12, %v103_v16  ;;  %v112_v21 = vadd.s32 %v108_v13, %v104_v17 }
  0x38   :  { %v154_v22 = vadd.f32 -510.0, %v113_v18  ;;  %v155_v23 = vadd.f32 -510.0, %v114_v19 }
  0x39   :  { %v115_v24 = vcvt.s32.f32 %v111_v20  ;;  %v116_v25 = vcvt.s32.f32 %v112_v21 }
  0x3a   :  { %v121_v26 = vmul.f32 0.00033829376, %v154_v22  ;;  %v122_v27 = vmul.f32 0.00033829376, %v155_v23 }
  0x3b   :  { %v156_v29 = vadd.f32 -510.0, %v115_v24  ;;  %v157_v30 = vadd.f32 -510.0, %v116_v25 }
  0x3c   :  { %v131_v31 = vcombine.low %v121_v26, %v122_v27 }
  0x3d   :  { %v123_v32 = vmul.f32 0.00033829376, %v156_v29  ;;  %v124_v33 = vmul.f32 0.00033829376, %v157_v30 }
  0x3e   :  { %v135_v34 = vadd.f32 %v131_v31, %v125_v28 }
  0x3f   :  { %v132_v36 = vcombine.low %v123_v32, %v124_v33 }
  0x40   :  { %137 = vst [vmem:[#allocation7] sm:$0xff] %v135_v34 }
  0x41   :  { %v136_v37 = vadd.f32 %v132_v36, %v126_v35 }
  0x43   :  { %138 = vst [vmem:[#allocation7 + $0x8] sm:$0xff] %v136_v37 }
  0x44   :  { %193 = shalt.err (!%p190_p12)
}
  0x45   :  { %s194_s27 = scalar_lea.hbm %s254_s2, 256 }
  0x46   :  { %p195_p13 = scmp.ne.s32.totalorder %s254_s2, %s194_s27  ;;  %p198_p0 = scmp.lt.u32.totalorder %s194_s27, %s254_s2 }
  0x48   :  { %p200_p1 = pnand %p198_p0, %p195_p13 }
  0x4a   :  { %203 = shalt.err (!%p200_p1)
}
  0x4b   :  { %148 = dma.vmem_to_hbm [thread:$0]  %s146_s1, 256, %s254_s2, [#allocation6]  }
  0x4c   :  { %206 = dma.done.wait [#allocation6], 256  }
  0x4d   :  { %207 = vsyncadd [#allocation6], 4294967040 }
  0x4e   :  { %152 = vsyncpa [#allocation5], 1 }
  0x4f   :  { %153 = vsyncpa [#allocation6], 1 }

</bundles_post_ra>
